<compile_context>
chip_gen: v7x
topology: tpu7x:2x2x1
jax: 0.10.0
libtpu: 0.0.40
codegen_flags: <defaults>
</compile_context>

<pallas_src>
import functools
import math

import jax
import jax.numpy as jnp
from jax import lax
from jax.experimental import pallas as pl
from jax.experimental.pallas import tpu as pltpu

EPSILON = 1e-5

_LANE_CANDIDATES = (1024, 512, 256, 128)
_CHUNK_TARGET_ELEMS = 64 * 1024          # ~256 KiB of f32 temporaries per array
_MIB = 1024 * 1024


def _round_up(x, m):
    return ((x + m - 1) // m) * m


@functools.lru_cache(maxsize=None)
def _tpu_params():
    """Return (vmem_capacity_bytes, num_tensorcores) with safe fallbacks."""
    vmem_cap = 128 * _MIB
    num_cores = 1
    try:
        info = pltpu.get_tpu_info()
        cap = getattr(info, "vmem_capacity_bytes", None)
        if cap:
            vmem_cap = int(cap)
        for name in ("num_tensorcores", "tensorcore_count", "num_cores",
                     "core_count", "num_cores_per_chip"):
            val = getattr(info, name, None)
            if val:
                num_cores = max(1, int(val))
                break
    except Exception:
        # Interpret mode / older jax: keep conservative defaults.
        pass
    return vmem_cap, num_cores


def _dice_kernel(pred_ref, targ_ref, inter_ref, union_ref, *,
                 block_rows, chunk_rows, blocks_per_split, total_rows,
                 grid_blocks):
    s = pl.program_id(0)                      # parallel split (megacore axis)
    j = pl.program_id(1)                      # reduction axis over row-blocks
    lanes = pred_ref.shape[-1]

    @pl.when(j == 0)
    def _init():
        inter_ref[...] = jnp.zeros_like(inter_ref)
        union_ref[...] = jnp.zeros_like(union_ref)

    gid = s * blocks_per_split + j            # global row-block id (traced)
    full_blocks = total_rows // block_rows    # static: blocks with no ragged rows

    def chunk_sums(r0, nrows, row_base):
        """(1, lanes) lane-wise partial sums over rows [r0, r0+nrows)."""
        x = pred_ref[pl.ds(r0, nrows), :].astype(jnp.float32)
        t = targ_ref[pl.ds(r0, nrows), :].astype(jnp.float32)
        # sigmoid(x) == 0.5 * tanh(x / 2) + 0.5 : keeps the transcendental on
        # the EUP slot (no exp + f32-divide expansion on the VPU).
        p = 0.5 * jnp.tanh(0.5 * x) + 0.5
        pt = p * t
        pu = p + t
        if row_base is not None:
            rid = row_base + r0 + lax.broadcasted_iota(
                jnp.int32, (nrows, lanes), 0)
            valid = rid < total_rows
            pt = jnp.where(valid, pt, 0.0)
            pu = jnp.where(valid, pu, 0.0)
        return (jnp.sum(pt, axis=0, keepdims=True),
                jnp.sum(pu, axis=0, keepdims=True))

    def block_partials(row_base):
        # Sub-chunked reduction: temporaries stay at (chunk_rows, lanes).
        nfull = block_rows // chunk_rows
        rem = block_rows % chunk_rows
        inter = jnp.zeros((1, lanes), jnp.float32)
        union = jnp.zeros((1, lanes), jnp.float32)
        if nfull == 1:
            di, du = chunk_sums(0, chunk_rows, row_base)
            inter, union = inter + di, union + du
        elif nfull > 1:
            def body(c, carry):
                ii, uu = carry
                r0 = pl.multiple_of(c * chunk_rows, chunk_rows)
                di, du = chunk_sums(r0, chunk_rows, row_base)
                return ii + di, uu + du
            inter, union = lax.fori_loop(0, nfull, body, (inter, union))
        if rem:
            di, du = chunk_sums(nfull * chunk_rows, rem, row_base)
            inter, union = inter + di, union + du
        return inter, union

    def accumulate(row_base):
        di, du = block_partials(row_base)
        inter_ref[...] += di
        union_ref[...] += du

    if grid_blocks == full_blocks:
        # Every grid step maps to a fully valid block: no masking compiled in.
        accumulate(None)
    else:
        @pl.when(gid < full_blocks)
        def _dense():
            accumulate(None)

        @pl.when(gid >= full_blocks)
        def _masked():
            # Ragged final block and (on multi-core splits) duplicated clamped
            # blocks: mask rows beyond total_rows.
            accumulate(gid * block_rows)


@functools.partial(jax.jit, static_argnames=("epsilon",))
def dice_loss(predict, target, epsilon=EPSILON):
    assert predict.shape == target.shape, (
        "the size of predict and target must be equal.")

    vmem_cap, num_cores = _tpu_params()
    # ~48 MiB scoped VMEM on 64 MiB parts (v7x), 64 MiB on 128 MiB parts.
    vmem_limit = min(int(vmem_cap * 0.75), 64 * _MIB)

    total = math.prod(predict.shape)
    pred_flat = predict.reshape(-1)
    targ_flat = target.reshape(-1)

    lanes = next((l for l in _LANE_CANDIDATES if total % l == 0), None)
    if lanes is None:
        # Rare ragged case: pad to a lane multiple.  sigmoid(-30) ~ 1e-13 and
        # target == 0, so the padded tail is numerically negligible.
        lanes = 128
        padded = _round_up(total, lanes)
        pred_flat = jnp.pad(pred_flat, (0, padded - total),
                            constant_values=-30.0)
        targ_flat = jnp.pad(targ_flat, (0, padded - total),
                            constant_values=0.0)
        total = padded

    rows = total // lanes

    # Sublane granularity of the narrowest streamed dtype (8/16/32 for 4/2/1B).
    min_itemsize = min(predict.dtype.itemsize, target.dtype.itemsize)
    sub = max(8, 32 // max(1, min_itemsize))

    # Per-step input block sized so 2 inputs x 2 pipeline buffers take ~half of
    # the scoped-VMEM budget; the rest covers the bounded chunk temporaries.
    bytes_per_elem = predict.dtype.itemsize + target.dtype.itemsize
    target_block_elems = (vmem_limit // 2) // (2 * bytes_per_elem)
    target_block_elems = max(64 * 1024, min(target_block_elems, 4 * 1024 * 1024))
    block_rows = min(rows, max(sub, _round_up(target_block_elems // lanes, sub)))

    # Inner chunk keeps sigmoid/mul/add temporaries to a few vregs' worth.
    chunk_rows = min(block_rows,
                     max(sub, _round_up(_CHUNK_TARGET_ELEMS // lanes, sub)))

    num_blocks = pl.cdiv(rows, block_rows)
    # Split across TensorCores only when the chip actually has more than one.
    num_splits = max(1, min(num_cores, num_blocks))
    blocks_per_split = pl.cdiv(num_blocks, num_splits)
    grid_blocks = num_splits * blocks_per_split

    pred2d = pred_flat.reshape(rows, lanes)
    targ2d = targ_flat.reshape(rows, lanes)

    if grid_blocks == num_blocks:
        def in_index(s, j):
            return (s * blocks_per_split + j, 0)
    else:
        # Clamp duplicated trailing blocks in-bounds; they are fully masked
        # out inside the kernel.
        def in_index(s, j):
            return (jnp.minimum(s * blocks_per_split + j, num_blocks - 1), 0)

    kernel = functools.partial(
        _dice_kernel,
        block_rows=block_rows,
        chunk_rows=chunk_rows,
        blocks_per_split=blocks_per_split,
        total_rows=rows,
        grid_blocks=grid_blocks,
    )

    cost = pl.CostEstimate(
        flops=6 * total,
        transcendentals=total,
        bytes_accessed=total * bytes_per_elem + 2 * num_splits * lanes * 4,
    )

    inter_p, union_p = pl.pallas_call(
        kernel,
        out_shape=(
            jax.ShapeDtypeStruct((num_splits, lanes), jnp.float32),
            jax.ShapeDtypeStruct((num_splits, lanes), jnp.float32),
        ),
        grid=(num_splits, blocks_per_split),
        in_specs=[
            pl.BlockSpec((block_rows, lanes), in_index),
            pl.BlockSpec((block_rows, lanes), in_index),
        ],
        out_specs=(
            pl.BlockSpec((1, lanes), lambda s, j: (s, 0)),
            pl.BlockSpec((1, lanes), lambda s, j: (s, 0)),
        ),
        compiler_params=pltpu.CompilerParams(
            # TODO(synk): on v7x verify the leading axis really shards across
            # both TensorCores; if the trace shows a serial 2x loop, switch
            # this axis to pltpu.CORE_PARALLEL.
            dimension_semantics=("parallel", "arbitrary"),
            vmem_limit_bytes=vmem_limit,
        ),
        cost_estimate=cost,
    )(pred2d, targ2d)

    intersection = jnp.sum(inter_p)
    union = jnp.sum(union_p)
    return 1.0 - 2.0 * (intersection + epsilon) / (union + epsilon)


def _dice_loss_ref(predict, target, epsilon=EPSILON):
    n = predict.shape[0]
    pred = jax.nn.sigmoid(predict).reshape(n, -1)
    targ = target.reshape(n, -1)
    intersection = jnp.sum(pred * targ)
    union = jnp.sum(pred + targ)
    return 1.0 - 2.0 * (intersection + epsilon) / (union + epsilon)


if __name__ == "__main__":
    key = jax.random.PRNGKey(0)
    k1, k2 = jax.random.split(key)

    # NCHW, matching a typical segmentation head: batch=2, channels=4, 16x16.
    predict = jax.random.normal(k1, (2, 4, 16, 16), dtype=jnp.float32)
    target = (jax.random.uniform(k2, (2, 4, 16, 16)) > 0.5).astype(jnp.float32)

    loss = dice_loss(predict, target)
    jax.block_until_ready(loss)

    ref = _dice_loss_ref(predict, target)
    assert jnp.allclose(loss, ref, atol=1e-5, rtol=1e-5), (loss, ref)

    print("KERNEL_OK")
</pallas_src>

<mosaic_0001>
module attributes {stable_mosaic.version = 11 : i64} {
  func.func @_dice_kernel(%arg0: i32, %arg1: i32, %arg2: memref<2x1024xf32, #tpu.memory_space<vmem>>, %arg3: memref<2x1024xf32, #tpu.memory_space<vmem>>, %arg4: memref<1x1024xf32, #tpu.memory_space<vmem>>, %arg5: memref<1x1024xf32, #tpu.memory_space<vmem>>) attributes {dimension_semantics = [#tpu.dimension_semantics<parallel>, #tpu.dimension_semantics<arbitrary>], iteration_bounds = array<i64: 1, 1>, scalar_prefetch = 0 : i64, scratch_operands = 0 : i64, tpu.core_type = #tpu.core_type<tc>, window_params = [{transform_indices = @transform_0, window_bounds = array<i64: 2, 1024>}, {transform_indices = @transform_1, window_bounds = array<i64: 2, 1024>}, {transform_indices = @transform_2, window_bounds = array<i64: 1, 1024>}, {transform_indices = @transform_3, window_bounds = array<i64: 1, 1024>}]} {
    %c0_i32 = arith.constant 0 : i32
    %0 = arith.cmpi eq, %arg1, %c0_i32 : i32
    %1 = arith.extui %0 : i1 to i32
    %c0_i32_0 = arith.constant 0 : i32
    %2 = arith.cmpi ne, %1, %c0_i32_0 : i32
    scf.if %2 {
      %cst_18 = arith.constant 0.000000e+00 : f32
      %28 = vector.broadcast %cst_18 : f32 to vector<1x1024xf32>
      %c0_19 = arith.constant 0 : index
      %c0_20 = arith.constant 0 : index
      %29 = vector.load %arg4[%c0_19, %c0_20] : memref<1x1024xf32, #tpu.memory_space<vmem>>, vector<1x1024xf32>
      tpu.vector_store %arg4[%c0_19, %c0_20], %28 {strides = array<i32>} : memref<1x1024xf32, #tpu.memory_space<vmem>>, vector<1x1024xf32>,
      %cst_21 = arith.constant 0.000000e+00 : f32
      %30 = vector.broadcast %cst_21 : f32 to vector<1x1024xf32>
      %c0_22 = arith.constant 0 : index
      %c0_23 = arith.constant 0 : index
      %31 = vector.load %arg5[%c0_22, %c0_23] : memref<1x1024xf32, #tpu.memory_space<vmem>>, vector<1x1024xf32>
      tpu.vector_store %arg5[%c0_22, %c0_23], %30 {strides = array<i32>} : memref<1x1024xf32, #tpu.memory_space<vmem>>, vector<1x1024xf32>,
    } else {
    }
    %cst = arith.constant 0.000000e+00 : f32
    %3 = vector.broadcast %cst : f32 to vector<1x1024xf32>
    %cst_1 = arith.constant 0.000000e+00 : f32
    %4 = vector.broadcast %cst_1 : f32 to vector<1x1024xf32>
    %c0 = arith.constant 0 : index
    %c0_2 = arith.constant 0 : index
    %5 = vector.load %arg2[%c0, %c0_2] : memref<2x1024xf32, #tpu.memory_space<vmem>>, vector<2x1024xf32>
    %c0_3 = arith.constant 0 : index
    %c0_4 = arith.constant 0 : index
    %6 = vector.load %arg3[%c0_3, %c0_4] : memref<2x1024xf32, #tpu.memory_space<vmem>>, vector<2x1024xf32>
    %cst_5 = arith.constant 5.000000e-01 : f32
    %7 = vector.broadcast %cst_5 : f32 to vector<2x1024xf32>
    %8 = arith.mulf %7, %5 : vector<2x1024xf32>
    %9 = math.tanh %8 : vector<2x1024xf32>
    %cst_6 = arith.constant 5.000000e-01 : f32
    %10 = vector.broadcast %cst_6 : f32 to vector<2x1024xf32>
    %11 = arith.mulf %10, %9 : vector<2x1024xf32>
    %cst_7 = arith.constant 5.000000e-01 : f32
    %12 = vector.broadcast %cst_7 : f32 to vector<2x1024xf32>
    %13 = arith.addf %11, %12 : vector<2x1024xf32>
    %14 = arith.mulf %13, %6 : vector<2x1024xf32>
    %15 = arith.addf %13, %6 : vector<2x1024xf32>
    %cst_8 = arith.constant dense<0.000000e+00> : vector<1024xf32>
    %16 = vector.multi_reduction <add>, %14, %cst_8 [0] : vector<2x1024xf32> to vector<1024xf32>
    %17 = vector.shape_cast %16 : vector<1024xf32> to vector<1x1024xf32>
    %cst_9 = arith.constant dense<0.000000e+00> : vector<1024xf32>
    %18 = vector.multi_reduction <add>, %15, %cst_9 [0] : vector<2x1024xf32> to vector<1024xf32>
    %19 = vector.shape_cast %18 : vector<1024xf32> to vector<1x1024xf32>
    %20 = arith.addf %3, %17 : vector<1x1024xf32>
    %21 = arith.addf %4, %19 : vector<1x1024xf32>
    %c0_10 = arith.constant 0 : index
    %c0_11 = arith.constant 0 : index
    %22 = vector.load %arg4[%c0_10, %c0_11] : memref<1x1024xf32, #tpu.memory_space<vmem>>, vector<1x1024xf32>
    %23 = arith.addf %22, %20 : vector<1x1024xf32>
    %c0_12 = arith.constant 0 : index
    %c0_13 = arith.constant 0 : index
    %24 = vector.load %arg4[%c0_12, %c0_13] : memref<1x1024xf32, #tpu.memory_space<vmem>>, vector<1x1024xf32>
    tpu.vector_store %arg4[%c0_12, %c0_13], %23 {strides = array<i32>} : memref<1x1024xf32, #tpu.memory_space<vmem>>, vector<1x1024xf32>,
    %c0_14 = arith.constant 0 : index
    %c0_15 = arith.constant 0 : index
    %25 = vector.load %arg5[%c0_14, %c0_15] : memref<1x1024xf32, #tpu.memory_space<vmem>>, vector<1x1024xf32>
    %26 = arith.addf %25, %21 : vector<1x1024xf32>
    %c0_16 = arith.constant 0 : index
    %c0_17 = arith.constant 0 : index
    %27 = vector.load %arg5[%c0_16, %c0_17] : memref<1x1024xf32, #tpu.memory_space<vmem>>, vector<1x1024xf32>
    tpu.vector_store %arg5[%c0_16, %c0_17], %26 {strides = array<i32>} : memref<1x1024xf32, #tpu.memory_space<vmem>>, vector<1x1024xf32>,
    return
  }
  func.func @transform_0(%arg0: i32, %arg1: i32) -> (i32, i32) {
    %c1_i32 = arith.constant 1 : i32
    %0 = arith.muli %arg0, %c1_i32 : i32
    %1 = arith.addi %0, %arg1 : i32
    %c0_i32 = arith.constant 0 : i32
    %c0_i32_0 = arith.constant 0 : i32
    return %1, %c0_i32 : i32, i32
  }
  func.func @transform_1(%arg0: i32, %arg1: i32) -> (i32, i32) {
    %c1_i32 = arith.constant 1 : i32
    %0 = arith.muli %arg0, %c1_i32 : i32
    %1 = arith.addi %0, %arg1 : i32
    %c0_i32 = arith.constant 0 : i32
    %c0_i32_0 = arith.constant 0 : i32
    return %1, %c0_i32 : i32, i32
  }
  func.func @transform_2(%arg0: i32, %arg1: i32) -> (i32, i32) {
    %c0_i32 = arith.constant 0 : i32
    %c0_i32_0 = arith.constant 0 : i32
    return %arg0, %c0_i32 : i32, i32
  }
  func.func @transform_3(%arg0: i32, %arg1: i32) -> (i32, i32) {
    %c0_i32 = arith.constant 0 : i32
    %c0_i32_0 = arith.constant 0 : i32
    return %arg0, %c0_i32 : i32, i32
  }
}

</mosaic_0001>

<bundles_post_ra>
// kernel: dice_loss.1
= control target key start
LH: loop header
LB: loop body
LE: loop exit
PB: predicated region body
PF: predicated region fallthrough
CT: control target
= control target key end

     0   :  { %9 = vsyncpa [#allocation3], 0  ;;  %s684_s0 = inlined_call_operand.hbm [shape: f32[2,1024], index: 0, kind: input, shape index: {}]   ;;  %s685_s1 = inlined_call_operand.hbm [shape: f32[2,1024], index: 1, kind: input, shape index: {}]   ;;  %s686_s2 = inlined_call_operand.hbm [shape: f32[1,1024], index: 2, kind: output, shape index: {0}]   ;;  %s687_s3 = inlined_call_operand.hbm [shape: f32[1,1024], index: 3, kind: output, shape index: {1}]  }
   0x1   :  { %10 = vsyncpa [#allocation6], 0 }
   0x2   :  { %11 = vsyncpa [#allocation4], 0 }
   0x3   :  { %12 = vsyncpa [#allocation9], 0  ;;  %s547_s12 = smov [#allocation2]   ;;  %s548_s14 = smov [#allocation5]  }
   0x4   :  { %s23_s13 = sshll.u32 %s547_s12, 4  ;;  %s37_s15 = sshll.u32 %s548_s14, 4  ;;  %s24_s13 = int_to_ptr.vmem [resolvable:$true] %s23_s13  ;;  %s38_s15 = int_to_ptr.vmem [resolvable:$true] %s37_s15 }
   0x5   :  { %s451_s18 = scalar_lea.hbm %s684_s0, 256 }
   0x6   :  { %p452_p0 = scmp.ne.s32.totalorder %s684_s0, %s451_s18  ;;  %p455_p1 = scmp.lt.u32.totalorder %s451_s18, %s684_s0 }
   0x8   :  { %p457_p2 = pnand %p455_p1, %p452_p0 }
   0xa   :  { %460 = shalt.err (!%p457_p2)
}
   0xb   :  { %s461_s23 = scalar_lea.vmem %s24_s13, 256  ;;  %p466_p4 = scmp.lt.s32.totalorder %s24_s13, %s24_s13 }
   0xc   :  { %p462_p3 = scmp.ne.s32.totalorder %s24_s13, %s461_s23  ;;  %p467_p5 = scmp.lt.s32.totalorder %s461_s23, %s461_s23 }
   0xe   :  { %p468_p6 = por %p467_p5, %p466_p4 }
  0x10   :  { %p469_p7 = pnand %p468_p6, %p462_p3 }
  0x12   :  { %472 = shalt.err (!%p469_p7)
}
  0x13   :  { %26 = dma.hbm_to_vmem [thread:$0]  %s684_s0, 256, %s24_s13, [#allocation3]  }
  0x14   :  { %s473_s28 = scalar_lea.hbm %s685_s1, 256 }
  0x15   :  { %p474_p8 = scmp.ne.s32.totalorder %s685_s1, %s473_s28  ;;  %p477_p9 = scmp.lt.u32.totalorder %s473_s28, %s685_s1 }
  0x17   :  { %p479_p10 = pnand %p477_p9, %p474_p8 }
  0x19   :  { %482 = shalt.err (!%p479_p10)
}
  0x1a   :  { %s483_s6 = scalar_lea.vmem %s38_s15, 256  ;;  %p488_p12 = scmp.lt.s32.totalorder %s38_s15, %s38_s15 }
  0x1b   :  { %p484_p11 = scmp.ne.s32.totalorder %s38_s15, %s483_s6  ;;  %p489_p13 = scmp.lt.s32.totalorder %s483_s6, %s483_s6 }
  0x1d   :  { %p490_p0 = por %p489_p13, %p488_p12 }
  0x1f   :  { %p491_p1 = pnand %p490_p0, %p484_p11 }
  0x21   :  { %494 = shalt.err (!%p491_p1)
}
  0x22   :  { %40 = dma.hbm_to_vmem [thread:$0]  %s685_s1, 256, %s38_s15, [#allocation6]  }
  0x23   :  { %539 = dma.done.wait [#allocation3], 256  }
  0x24   :  { %540 = vsyncadd [#allocation3], 4294967040 }
  0x25   :  { %541 = dma.done.wait [#allocation6], 256  }
  0x26   :  { %542 = vsyncadd [#allocation6], 4294967040  ;;  %v55_v0 = vld [vmem:[#allocation2] sm:$0xff]  ;;  %v56_v1 = vld [vmem:[#allocation2 + $0x8] sm:$0xff]  ;;  %v549_v4 = vmov 1983009808   ;;  %v77_v6 = vlaneseq }
  0x27   :  { %v59_v2 = vmul.f32 0.5, %v55_v0  ;;  %v60_v3 = vmul.f32 0.5, %v56_v1  ;;  %v75_v5 = vunpack.c.l.s4 %v549_v4  ;;  %v550_v7 = vmov 1966171168   ;;  %v57_v14 = vld [vmem:[#allocation5] sm:$0xff]  ;;  %v58_v17 = vld [vmem:[#allocation5 + $0x8] sm:$0xff] }
  0x28   :  { %v302_v8 = vunpack.c.l.s4 %v550_v7  ;;  %v78_v10 = vshrl.u32 %v77_v6, 7  ;;  %vm115_vm0 = vcmask 1041408   ;;  %s551_s1 = smov [#allocation7]  }
  0x29   :  { %447 = vtanh.f32 %v59_v2  ;;  %v76_v9 = vunpack.c.0.s8 %v75_v5  ;;  %s416_s8 = sshll.u32 %s551_s1, 4  ;;  %s417_s8 = int_to_ptr.vmem [resolvable:$true] %s416_s8 }
  0x2a   :  { %449 = vtanh.f32 %v60_v3  ;;  %v303_v16 = vunpack.c.0.s8 %v302_v8  ;;  %s495_s9 = scalar_lea.vmem %s417_s8, 128  ;;  %p500_p3 = scmp.lt.s32.totalorder %s417_s8, %s417_s8 }
  0x2b   :  { %v597_v19 = vsub.s32 %v76_v9, %v78_v10  ;;  %p496_p2 = scmp.ne.s32.totalorder %s417_s8, %s495_s9  ;;  %p501_p4 = scmp.lt.s32.totalorder %s495_s9, %s495_s9 }
  0x2c   :  { %v599_v24 = vsub.s32 %v303_v16, %v78_v10 }
  0x2d   :  { %p502_p5 = por %p501_p4, %p500_p3 }
  0x2f   :  { %p503_p6 = pnand %p502_p5, %p496_p2 }
  0x33   :  { %v448_v11 = vpop.eup %447 }
  0x34   :  { %v450_v12 = vpop.eup %449  ;;  %v63_v13 = vmul.f32 0.5, %v448_v11 }
  0x35   :  { %v64_v15 = vmul.f32 0.5, %v450_v12 }
  0x36   :  { %v65_v18 = vadd.f32 0.5, %v63_v13 }
  0x37   :  { %v66_v20 = vadd.f32 0.5, %v64_v15 }
  0x38   :  { %v67_v21 = vmul.f32 %v65_v18, %v57_v14  ;;  %v69_v22 = vadd.f32 %v65_v18, %v57_v14 }
  0x39   :  { %v68_v23 = vmul.f32 %v66_v20, %v58_v17  ;;  %v601_v25 = vadd.f32 %v66_v20, %v58_v17 }
  0x3a   :  { %v73_v26 = vcombine.high %v67_v21, %v67_v21  ;;  %v80_v27 = vrot.slane %v67_v21, %v597_v19  ;;  %v174_v28 = vcombine.high %v69_v22, %v69_v22  ;;  %v605_v29 = vrot.slane %v69_v22, %v597_v19 }
  0x3b   :  { %v90_v30 = vcombine.high %v68_v23, %v68_v23  ;;  %v97_v31 = vrot.slane %v68_v23, %v597_v19  ;;  %v191_v32 = vcombine.high %v601_v25, %v601_v25  ;;  %v612_v33 = vrot.slane %v601_v25, %v597_v19 }
  0x3c   :  { %v87_v34 = vrot.slane %v73_v26, %v597_v19  ;;  %v88_v35 = vcombine.high %v80_v27, %v80_v27  ;;  %v116_v36 = vsel %vm115_vm0, %v80_v27, 0.0  ;;  %v617_v37 = vrot.slane %v174_v28, %v597_v19 }
  0x3d   :  { %v104_v38 = vrot.slane %v90_v30, %v597_v19  ;;  %v105_v39 = vcombine.high %v97_v31, %v97_v31  ;;  %v117_v40 = vrot.slane %v116_v36, 4  ;;  %v144_v41 = vsel %vm115_vm0, %v97_v31, 0.0 }
  0x3e   :  { %v89_v42 = vcombine.high %v87_v34, %v87_v34  ;;  %v123_v43 = vsel %vm115_vm0, %v88_v35, 0.0  ;;  %v130_v44 = vsel %vm115_vm0, %v87_v34, 0.0  ;;  %v145_v45 = vrot.slane %v144_v41, 4 }
  0x3f   :  { %v106_v46 = vcombine.high %v104_v38, %v104_v38  ;;  %v118_v47 = vadd.f32 %v117_v40, %v116_v36  ;;  %v124_v48 = vrot.slane %v123_v43, 4  ;;  %v131_v49 = vrot.slane %v130_v44, 4 }
  0x40   :  { %v137_v50 = vsel %vm115_vm0, %v89_v42, 0.0  ;;  %v146_v51 = vadd.f32 %v145_v45, %v144_v41  ;;  %v151_v52 = vsel %vm115_vm0, %v105_v39, 0.0  ;;  %v158_v53 = vsel %vm115_vm0, %v104_v38, 0.0 }
  0x41   :  { %v119_v54 = vrot.slane %v118_v47, 2  ;;  %v125_v55 = vadd.f32 %v124_v48, %v123_v43  ;;  %v132_v56 = vadd.f32 %v131_v49, %v130_v44  ;;  %v138_v57 = vrot.slane %v137_v50, 4 }
  0x42   :  { %v147_v58 = vrot.slane %v146_v51, 2  ;;  %v152_v59 = vrot.slane %v151_v52, 4  ;;  %v159_v60 = vrot.slane %v158_v53, 4  ;;  %v165_v61 = vsel %vm115_vm0, %v106_v46, 0.0 }
  0x43   :  { %v120_v62 = vadd.f32 %v119_v54, %v118_v47  ;;  %v126_v63 = vrot.slane %v125_v55, 2  ;;  %v133_v0 = vrot.slane %v132_v56, 2  ;;  %v139_v1 = vadd.f32 %v138_v57, %v137_v50 }
  0x44   :  { %v148_v2 = vadd.f32 %v147_v58, %v146_v51  ;;  %v153_v3 = vadd.f32 %v152_v59, %v151_v52  ;;  %v160_v4 = vadd.f32 %v159_v60, %v158_v53  ;;  %v166_v5 = vrot.slane %v165_v61, 4 }
  0x45   :  { %v121_v6 = vrot.slane %v120_v62, 1  ;;  %v127_v7 = vadd.f32 %v126_v63, %v125_v55  ;;  %v134_v8 = vadd.f32 %v133_v0, %v132_v56  ;;  %v140_v9 = vrot.slane %v139_v1, 2 }
  0x46   :  { %v149_v10 = vrot.slane %v148_v2, 1  ;;  %v154_v11 = vrot.slane %v153_v3, 2  ;;  %v161_v12 = vrot.slane %v160_v4, 2  ;;  %v167_v13 = vadd.f32 %v166_v5, %v165_v61 }
  0x47   :  { %v122_v14 = vadd.f32 %v121_v6, %v120_v62  ;;  %v128_v15 = vrot.slane %v127_v7, 1  ;;  %v135_v16 = vrot.slane %v134_v8, 1  ;;  %v141_v17 = vadd.f32 %v140_v9, %v139_v1 }
  0x48   :  { %v150_v18 = vadd.f32 %v149_v10, %v148_v2  ;;  %v155_v20 = vadd.f32 %v154_v11, %v153_v3  ;;  %v162_v21 = vadd.f32 %v161_v12, %v160_v4  ;;  %v168_v22 = vrot.slane %v167_v13, 2 }
  0x49   :  { %v129_v23 = vadd.f32 %v128_v15, %v127_v7  ;;  %v136_v26 = vadd.f32 %v135_v16, %v134_v8  ;;  %v142_v27 = vrot.slane %v141_v17, 1  ;;  %v189_v28 = vcombine.high %v605_v29, %v605_v29 }
  0x4a   :  { %v156_v30 = vrot.slane %v155_v20, 1  ;;  %v163_v31 = vrot.slane %v162_v21, 1  ;;  %v169_v34 = vadd.f32 %v168_v22, %v167_v13  ;;  %v190_v35 = vcombine.high %v617_v37, %v617_v37 }
  0x4b   :  { %v143_v36 = vadd.f32 %v142_v27, %v141_v17  ;;  %v297_v38 = vcombine.low %v122_v14, %v129_v23  ;;  %v205_v39 = vrot.slane %v191_v32, %v597_v19  ;;  %v206_v40 = vcombine.high %v612_v33, %v612_v33 }
  0x4c   :  { %v157_v41 = vadd.f32 %v156_v30, %v155_v20  ;;  %v164_v42 = vadd.f32 %v163_v31, %v162_v21  ;;  %v170_v43 = vrot.slane %v169_v34, 1  ;;  %v216_v44 = vsel %vm115_vm0, %v605_v29, 0.0 }
  0x4d   :  { %v298_v45 = vcombine.low %v136_v26, %v143_v36  ;;  %v307_v46 = vrot.slane %v297_v38, %v599_v24  ;;  %v207_v47 = vcombine.high %v205_v39, %v205_v39  ;;  %v217_v48 = vrot.slane %v216_v44, 4 }
  0x4e   :  { %v171_v49 = vadd.f32 %v170_v43, %v169_v34  ;;  %v299_v50 = vcombine.low %v150_v18, %v157_v41  ;;  %v223_v51 = vsel %vm115_vm0, %v189_v28, 0.0  ;;  %v230_v19 = vsel %vm115_vm0, %v617_v37, 0.0 }
  0x4f   :  { %v314_v25 = vrot.slane %v298_v45, %v599_v24  ;;  %v218_v32 = vadd.f32 %v217_v48, %v216_v44  ;;  %v224_v52 = vrot.slane %v223_v51, 4  ;;  %v231_v53 = vrot.slane %v230_v19, 4 }
  0x50   :  { %v300_v54 = vcombine.low %v164_v42, %v171_v49  ;;  %v321_v29 = vrot.slane %v299_v50, %v599_v24  ;;  %v237_v55 = vsel %vm115_vm0, %v190_v35, 0.0  ;;  %v244_v56 = vsel %vm115_vm0, %v612_v33, 0.0 }
  0x51   :  { %v329_v57 = vcombine.low %v307_v46, %v314_v25  ;;  %v219_v58 = vrot.slane %v218_v32, 2  ;;  %v225_v59 = vadd.f32 %v224_v52, %v223_v51  ;;  %v232_v60 = vadd.f32 %v231_v53, %v230_v19 }
  0x52   :  { %v328_v61 = vrot.slane %v300_v54, %v599_v24  ;;  %v238_v37 = vrot.slane %v237_v55, 4  ;;  %v245_v62 = vrot.slane %v244_v56, 4  ;;  %v251_v63 = vsel %vm115_vm0, %v206_v40, 0.0 }
  0x53   :  { %v337_v0 = vrot.slane %v329_v57, %v599_v24  ;;  %v220_v1 = vadd.f32 %v219_v58, %v218_v32  ;;  %v226_v2 = vrot.slane %v225_v59, 2  ;;  %v233_v3 = vrot.slane %v232_v60, 2 }
  0x54   :  { %v330_v4 = vcombine.low %v321_v29, %v328_v61  ;;  %v239_v5 = vadd.f32 %v238_v37, %v237_v55  ;;  %v246_v6 = vadd.f32 %v245_v62, %v244_v56  ;;  %v252_v7 = vrot.slane %v251_v63, 4 }
  0x55   :  { %v221_v33 = vrot.slane %v220_v1, 1  ;;  %v227_v8 = vadd.f32 %v226_v2, %v225_v59  ;;  %v234_v9 = vadd.f32 %v233_v3, %v232_v60  ;;  %v258_v10 = vsel %vm115_vm0, %v205_v39, 0.0 }
  0x56   :  { %v344_v11 = vrot.slane %v330_v4, %v599_v24  ;;  %v240_v12 = vrot.slane %v239_v5, 2  ;;  %v247_v13 = vrot.slane %v246_v6, 2  ;;  %v253_v14 = vadd.f32 %v252_v7, %v251_v63 }
  0x57   :  { %v228_v15 = vrot.slane %v227_v8, 1  ;;  %v235_v16 = vrot.slane %v234_v9, 1  ;;  %v259_v17 = vrot.slane %v258_v10, 4  ;;  %v222_v23 = vadd.f32 %v221_v33, %v220_v1 }
  0x58   :  { %v345_v18 = vcombine.low %v337_v0, %v344_v11  ;;  %v241_v20 = vadd.f32 %v240_v12, %v239_v5  ;;  %v248_v21 = vadd.f32 %v247_v13, %v246_v6  ;;  %v254_v22 = vrot.slane %v253_v14, 2 }
  0x59   :  { %v229_v26 = vadd.f32 %v228_v15, %v227_v8  ;;  %v260_v27 = vadd.f32 %v259_v17, %v258_v10  ;;  %v265_v28 = vsel %vm115_vm0, %v207_v47, 0.0  ;;  %v236_v35 = vadd.f32 %v235_v16, %v234_v9 }
  0x5a   :  { %v242_v30 = vrot.slane %v241_v20, 1  ;;  %v249_v31 = vrot.slane %v248_v21, 1  ;;  %v255_v34 = vadd.f32 %v254_v22, %v253_v14  ;;  %v266_v38 = vrot.slane %v265_v28, 4  ;;  %348 = vst [vmem:[#allocation7] sm:$0xff] %v345_v18 }
  0x5b   :  { %v261_v36 = vrot.slane %v260_v27, 2 }
  0x5c   :  { %v243_v39 = vadd.f32 %v242_v30, %v241_v20  ;;  %v256_v40 = vrot.slane %v255_v34, 1  ;;  %v267_v42 = vadd.f32 %v266_v38, %v265_v28 }
  0x5d   :  { %v262_v41 = vadd.f32 %v261_v36, %v260_v27 }
  0x5e   :  { %506 = shalt.err (!%p503_p6)
}
  0x5f   :  { %s507_s12 = scalar_lea.hbm %s686_s2, 128 }
  0x60   :  { %p508_p7 = scmp.ne.s32.totalorder %s686_s2, %s507_s12  ;;  %p511_p8 = scmp.lt.u32.totalorder %s507_s12, %s686_s2 }
  0x62   :  { %p513_p9 = pnand %p511_p8, %p508_p7 }
  0x64   :  { %516 = shalt.err (!%p513_p9)
}
  0x65   :  { %419 = dma.vmem_to_hbm [thread:$0]  %s417_s8, 128, %s686_s2, [#allocation4]   ;;  %v250_v43 = vadd.f32 %v249_v31, %v248_v21  ;;  %v358_v44 = vcombine.low %v222_v23, %v229_v26  ;;  %v257_v45 = vadd.f32 %v256_v40, %v255_v34  ;;  %v263_v46 = vrot.slane %v262_v41, 1 }
  0x66   :  { %v268_v47 = vrot.slane %v267_v42, 2  ;;  %v359_v48 = vcombine.low %v236_v35, %v243_v39  ;;  %s552_s2 = smov [#allocation8]  }
  0x67   :  { %v368_v50 = vrot.slane %v358_v44, %v599_v24  ;;  %v264_v51 = vadd.f32 %v263_v46, %v262_v41  ;;  %v360_v25 = vcombine.low %v250_v43, %v257_v45  ;;  %s426_s19 = sshll.u32 %s552_s2, 4  ;;  %s427_s19 = int_to_ptr.vmem [resolvable:$true] %s426_s19 }
  0x68   :  { %v269_v49 = vadd.f32 %v268_v47, %v267_v42  ;;  %v375_v32 = vrot.slane %v359_v48, %v599_v24  ;;  %s517_s20 = scalar_lea.vmem %s427_s19, 128  ;;  %p522_p11 = scmp.lt.s32.totalorder %s427_s19, %s427_s19 }
  0x69   :  { %v382_v54 = vrot.slane %v360_v25, %v599_v24  ;;  %p518_p10 = scmp.ne.s32.totalorder %s427_s19, %s517_s20  ;;  %p523_p12 = scmp.lt.s32.totalorder %s517_s20, %s517_s20 }
  0x6a   :  { %v270_v19 = vrot.slane %v269_v49, 1  ;;  %v390_v29 = vcombine.low %v368_v50, %v375_v32 }
  0x6b   :  { %p524_p13 = por %p523_p12, %p522_p11 }
  0x6c   :  { %v271_v52 = vadd.f32 %v270_v19, %v269_v49  ;;  %v398_v57 = vrot.slane %v390_v29, %v599_v24 }
  0x6d   :  { %p525_p0 = pnand %p524_p13, %p518_p10 }
  0x6e   :  { %v361_v53 = vcombine.low %v264_v51, %v271_v52 }
  0x70   :  { %v389_v55 = vrot.slane %v361_v53, %v599_v24 }
  0x72   :  { %v391_v56 = vcombine.low %v382_v54, %v389_v55 }
  0x74   :  { %v405_v58 = vrot.slane %v391_v56, %v599_v24 }
  0x76   :  { %v406_v59 = vcombine.low %v398_v57, %v405_v58 }
  0x78   :  { %409 = vst [vmem:[#allocation8] sm:$0xff] %v406_v59 }
  0x79   :  { %528 = shalt.err (!%p525_p0)
}
  0x7a   :  { %s529_s23 = scalar_lea.hbm %s687_s3, 128 }
  0x7b   :  { %p530_p1 = scmp.ne.s32.totalorder %s687_s3, %s529_s23  ;;  %p533_p2 = scmp.lt.u32.totalorder %s529_s23, %s687_s3 }
  0x7d   :  { %p535_p3 = pnand %p533_p2, %p530_p1 }
  0x7f   :  { %538 = shalt.err (!%p535_p3)
}
  0x80   :  { %429 = dma.vmem_to_hbm [thread:$0]  %s427_s19, 128, %s687_s3, [#allocation9]  }
  0x81   :  { %543 = dma.done.wait [#allocation4], 128  }
  0x82   :  { %544 = vsyncadd [#allocation4], 4294967168 }
  0x83   :  { %545 = dma.done.wait [#allocation9], 128  }
  0x84   :  { %546 = vsyncadd [#allocation9], 4294967168 }
  0x85   :  { %436 = vsyncpa [#allocation3], 1 }
  0x86   :  { %437 = vsyncpa [#allocation6], 1 }
  0x87   :  { %438 = vsyncpa [#allocation4], 1 }
  0x88   :  { %439 = vsyncpa [#allocation9], 1 }

</bundles_post_ra>
